<compile_context>
chip_gen: v7x
topology: tpu7x:2x2x1
jax: 0.10.0
libtpu: 0.0.40
codegen_flags: <defaults>
</compile_context>

<pallas_src>
import jax
import jax.numpy as jnp
from jax.experimental import pallas as pl
from jax.experimental.pallas import tpu as pltpu


def conv_block_kernel(xp_ref, w_ref, b_ref, o_ref):
    """One grid step = one (batch, row-tile) output block.

    xp_ref: (1, H+2, W+2, Cin)   bf16  zero-padded input image (resident per b)
    w_ref : (9*Cin, Cout_p)      bf16  conv weight, taps flattened into K
    b_ref : (1, Cout_p)          f32   bias (lane-padded)
    o_ref : (1, tile_h*W, Cout_p) f32  flattened output row-tile
    """
    Wp = xp_ref.shape[2]              # W + 2
    Cin = xp_ref.shape[3]
    W = Wp - 2
    M = o_ref.shape[1]                # tile_h * W
    Coutp = o_ref.shape[2]
    TH = M // W                       # tile_h

    t = pl.program_id(1)
    row0 = pl.multiple_of(t * TH, TH)  # first (padded) input row of this tile

    # Gather the 9 shifted (TH, W, Cin) patches and fuse them along the lane
    # axis -> one (M, 9*Cin) x (9*Cin, Cout_p) MXU matmul instead of 9 small
    # K=Cin matmuls.
    taps = []
    for kh in range(3):
        for kw in range(3):
            taps.append(xp_ref[0, pl.ds(row0 + kh, TH), kw:kw + W, :])
    patches = jnp.concatenate(taps, axis=-1).reshape(M, 9 * Cin)

    acc = jnp.dot(patches, w_ref[...], preferred_element_type=jnp.float32)
    acc = jnp.maximum(acc + b_ref[...], 0.0)          # bias + ReLU in f32
    o_ref[0] = acc.astype(o_ref.dtype)


def _pick_tile_h(H, W):
    """Row tile: ~128-256 matmul rows, divides H, sublane-aligned flat tile,
    and (when possible) >=2 tiles so the grid has enough parallel steps."""
    target = max(1, 256 // max(W, 1))
    th = min(target, H)
    while th > 1 and H % th:
        th -= 1
    if th == H and H > 1:             # prefer >= 2 row tiles (pipeline/megacore)
        for cand in range(H // 2, 0, -1):
            if H % cand == 0:
                th = cand
                break
    if th != H and (th * W) % 8:      # keep the flattened output block aligned
        th = H
    return th


@jax.jit
def conv_block_forward(x_nchw, weight, bias):
    """Conv_Block forward: Conv2d(k=3, stride=1, pad=1, bias=True) + ReLU.

    x_nchw : (N, Cin, H, W)  f32   weight : (Cout, Cin, 3, 3)   bias : (Cout,)
    returns: (N, Cout, H, W) f32
    """
    N, Cin, H, W = x_nchw.shape
    Cout = weight.shape[0]
    Coutp = ((Cout + 127) // 128) * 128          # lane-dense output channels

    tile_h = _pick_tile_h(H, W)
    num_t = H // tile_h

    # NCHW -> NHWC, zero halo (padding=1), bf16 for the MXU (single XLA pass).
    x_nhwc = jnp.transpose(x_nchw, (0, 2, 3, 1))
    x_pad = jnp.pad(x_nhwc, ((0, 0), (1, 1), (1, 1), (0, 0))).astype(jnp.bfloat16)

    # (Cout, Cin, kh, kw) -> (kh, kw, Cin, Cout) -> (9*Cin, Cout_p), bf16.
    w_k = jnp.transpose(weight, (2, 3, 1, 0)).reshape(9 * Cin, Cout)
    w_k = jnp.pad(w_k, ((0, 0), (0, Coutp - Cout))).astype(jnp.bfloat16)
    b_k = jnp.pad(bias, (0, Coutp - Cout)).reshape(1, Coutp).astype(jnp.float32)

    out_flat = pl.pallas_call(
        conv_block_kernel,
        out_shape=jax.ShapeDtypeStruct((N, H * W, Coutp), jnp.float32),
        grid=(N, num_t),
        in_specs=[
            # whole padded image per batch element (resident across row tiles)
            pl.BlockSpec((1, H + 2, W + 2, Cin), lambda b, t: (b, 0, 0, 0)),
            pl.BlockSpec((9 * Cin, Coutp), lambda b, t: (0, 0)),
            pl.BlockSpec((1, Coutp), lambda b, t: (0, 0)),
        ],
        out_specs=pl.BlockSpec((1, tile_h * W, Coutp), lambda b, t: (b, t, 0)),
        compiler_params=pltpu.CompilerParams(
            dimension_semantics=("parallel", "parallel")),
    )(x_pad, w_k, b_k)

    out = out_flat.reshape(N, H, W, Coutp)[..., :Cout]
    return jnp.transpose(out, (0, 3, 1, 2))


def init_conv_block_params(key, in_channel, out_channel):
    """Kaiming-normal(relu) weight + PyTorch-default uniform bias init."""
    k_w, k_b = jax.random.split(key)
    fan_in = in_channel * 3 * 3
    std = (2.0 / fan_in) ** 0.5
    weight = std * jax.random.normal(k_w, (out_channel, in_channel, 3, 3),
                                     dtype=jnp.float32)
    bound = 1.0 / (fan_in ** 0.5)
    bias = jax.random.uniform(k_b, (out_channel,), jnp.float32,
                              minval=-bound, maxval=bound)
    return weight, bias


if __name__ == "__main__":
    key = jax.random.PRNGKey(0)
    k_x, k_p = jax.random.split(key)

    N, Cin, Cout, H, W = 2, 4, 8, 16, 16
    x = jax.random.normal(k_x, (N, Cin, H, W), dtype=jnp.float32)
    weight, bias = init_conv_block_params(k_p, Cin, Cout)

    out = conv_block_forward(x, weight, bias)
    out = jax.block_until_ready(out)

    # Reference (nn.Conv2d stride=1 pad=1 + ReLU semantics). Kernel uses bf16
    # matmul operands with f32 accumulation, so compare with a bf16-level tol.
    ref = jax.lax.conv_general_dilated(
        x, weight, window_strides=(1, 1), padding=((1, 1), (1, 1)),
        dimension_numbers=("NCHW", "OIHW", "NCHW"))
    ref = jnp.maximum(ref + bias.reshape(1, Cout, 1, 1), 0.0)

    assert out.shape == (N, Cout, H, W)
    assert jnp.allclose(out, ref, atol=5e-2, rtol=5e-2)

    print("KERNEL_OK")
</pallas_src>

<mosaic_0001>
module attributes {stable_mosaic.version = 11 : i64} {
  func.func @conv_block_kernel(%arg0: i32, %arg1: i32, %arg2: memref<1x18x18x4xbf16, #tpu.memory_space<vmem>>, %arg3: memref<36x128xbf16, #tpu.memory_space<vmem>>, %arg4: memref<1x128xf32, #tpu.memory_space<vmem>>, %arg5: memref<1x128x128xf32, #tpu.memory_space<vmem>>) attributes {dimension_semantics = [#tpu.dimension_semantics<parallel>, #tpu.dimension_semantics<parallel>], iteration_bounds = array<i64: 2, 2>, scalar_prefetch = 0 : i64, scratch_operands = 0 : i64, tpu.core_type = #tpu.core_type<tc>, window_params = [{transform_indices = @transform_0, window_bounds = array<i64: 1, 18, 18, 4>}, {pipeline_mode = #tpu.pipeline_mode<synchronous>, transform_indices = @transform_1, window_bounds = array<i64: 36, 128>}, {pipeline_mode = #tpu.pipeline_mode<synchronous>, transform_indices = @transform_2, window_bounds = array<i64: 1, 128>}, {transform_indices = @transform_3, window_bounds = array<i64: 1, 128, 128>}]} {
    %c8_i32 = arith.constant 8 : i32
    %0 = arith.muli %arg1, %c8_i32 : i32
    %1 = tpu.assume_multiple %0, 8 : i32
    %c0_i32 = arith.constant 0 : i32
    %2 = arith.addi %1, %c0_i32 : i32
    %c0 = arith.constant 0 : index
    %3 = arith.index_cast %2 : i32 to index
    %c0_0 = arith.constant 0 : index
    %c0_1 = arith.constant 0 : index
    %4 = vector.load %arg2[%c0, %3, %c0_0, %c0_1] : memref<1x18x18x4xbf16, #tpu.memory_space<vmem>>, vector<1x8x16x4xbf16>
    %5 = vector.shape_cast %4 : vector<1x8x16x4xbf16> to vector<8x16x4xbf16>
    %c0_i32_2 = arith.constant 0 : i32
    %6 = arith.addi %1, %c0_i32_2 : i32
    %c0_3 = arith.constant 0 : index
    %7 = arith.index_cast %6 : i32 to index
    %c1 = arith.constant 1 : index
    %c0_4 = arith.constant 0 : index
    %8 = vector.load %arg2[%c0_3, %7, %c1, %c0_4] : memref<1x18x18x4xbf16, #tpu.memory_space<vmem>>, vector<1x8x16x4xbf16>
    %9 = vector.shape_cast %8 : vector<1x8x16x4xbf16> to vector<8x16x4xbf16>
    %c0_i32_5 = arith.constant 0 : i32
    %10 = arith.addi %1, %c0_i32_5 : i32
    %c0_6 = arith.constant 0 : index
    %11 = arith.index_cast %10 : i32 to index
    %c2 = arith.constant 2 : index
    %c0_7 = arith.constant 0 : index
    %12 = vector.load %arg2[%c0_6, %11, %c2, %c0_7] : memref<1x18x18x4xbf16, #tpu.memory_space<vmem>>, vector<1x8x16x4xbf16>
    %13 = vector.shape_cast %12 : vector<1x8x16x4xbf16> to vector<8x16x4xbf16>
    %c1_i32 = arith.constant 1 : i32
    %14 = arith.addi %1, %c1_i32 : i32
    %c0_8 = arith.constant 0 : index
    %15 = arith.index_cast %14 : i32 to index
    %c0_9 = arith.constant 0 : index
    %c0_10 = arith.constant 0 : index
    %16 = vector.load %arg2[%c0_8, %15, %c0_9, %c0_10] : memref<1x18x18x4xbf16, #tpu.memory_space<vmem>>, vector<1x8x16x4xbf16>
    %17 = vector.shape_cast %16 : vector<1x8x16x4xbf16> to vector<8x16x4xbf16>
    %c1_i32_11 = arith.constant 1 : i32
    %18 = arith.addi %1, %c1_i32_11 : i32
    %c0_12 = arith.constant 0 : index
    %19 = arith.index_cast %18 : i32 to index
    %c1_13 = arith.constant 1 : index
    %c0_14 = arith.constant 0 : index
    %20 = vector.load %arg2[%c0_12, %19, %c1_13, %c0_14] : memref<1x18x18x4xbf16, #tpu.memory_space<vmem>>, vector<1x8x16x4xbf16>
    %21 = vector.shape_cast %20 : vector<1x8x16x4xbf16> to vector<8x16x4xbf16>
    %c1_i32_15 = arith.constant 1 : i32
    %22 = arith.addi %1, %c1_i32_15 : i32
    %c0_16 = arith.constant 0 : index
    %23 = arith.index_cast %22 : i32 to index
    %c2_17 = arith.constant 2 : index
    %c0_18 = arith.constant 0 : index
    %24 = vector.load %arg2[%c0_16, %23, %c2_17, %c0_18] : memref<1x18x18x4xbf16, #tpu.memory_space<vmem>>, vector<1x8x16x4xbf16>
    %25 = vector.shape_cast %24 : vector<1x8x16x4xbf16> to vector<8x16x4xbf16>
    %c2_i32 = arith.constant 2 : i32
    %26 = arith.addi %1, %c2_i32 : i32
    %c0_19 = arith.constant 0 : index
    %27 = arith.index_cast %26 : i32 to index
    %c0_20 = arith.constant 0 : index
    %c0_21 = arith.constant 0 : index
    %28 = vector.load %arg2[%c0_19, %27, %c0_20, %c0_21] : memref<1x18x18x4xbf16, #tpu.memory_space<vmem>>, vector<1x8x16x4xbf16>
    %29 = vector.shape_cast %28 : vector<1x8x16x4xbf16> to vector<8x16x4xbf16>
    %c2_i32_22 = arith.constant 2 : i32
    %30 = arith.addi %1, %c2_i32_22 : i32
    %c0_23 = arith.constant 0 : index
    %31 = arith.index_cast %30 : i32 to index
    %c1_24 = arith.constant 1 : index
    %c0_25 = arith.constant 0 : index
    %32 = vector.load %arg2[%c0_23, %31, %c1_24, %c0_25] : memref<1x18x18x4xbf16, #tpu.memory_space<vmem>>, vector<1x8x16x4xbf16>
    %33 = vector.shape_cast %32 : vector<1x8x16x4xbf16> to vector<8x16x4xbf16>
    %c2_i32_26 = arith.constant 2 : i32
    %34 = arith.addi %1, %c2_i32_26 : i32
    %c0_27 = arith.constant 0 : index
    %35 = arith.index_cast %34 : i32 to index
    %c2_28 = arith.constant 2 : index
    %c0_29 = arith.constant 0 : index
    %36 = vector.load %arg2[%c0_27, %35, %c2_28, %c0_29] : memref<1x18x18x4xbf16, #tpu.memory_space<vmem>>, vector<1x8x16x4xbf16>
    %37 = vector.shape_cast %36 : vector<1x8x16x4xbf16> to vector<8x16x4xbf16>
    %38 = tpu.concatenate %5, %9, %13, %17, %21, %25, %29, %33, %37 in 2 : vector<8x16x4xbf16>, vector<8x16x4xbf16>, vector<8x16x4xbf16>, vector<8x16x4xbf16>, vector<8x16x4xbf16>, vector<8x16x4xbf16>, vector<8x16x4xbf16>, vector<8x16x4xbf16>, vector<8x16x4xbf16> -> vector<8x16x36xbf16>
    %39 = vector.shape_cast %38 : vector<8x16x36xbf16> to vector<128x36xbf16>
    %c0_30 = arith.constant 0 : index
    %c0_31 = arith.constant 0 : index
    %40 = vector.load %arg3[%c0_30, %c0_31] : memref<36x128xbf16, #tpu.memory_space<vmem>>, vector<36x128xbf16>
    %cst = arith.constant dense<0.000000e+00> : vector<128x128xf32>
    %41 = tpu.matmul %39, %40, %cst {dimension_numbers = #tpu.dot_dimension_numbers<[1], [0], [0], [1], [0, 0, 1, 1], [], []>} : vector<128x36xbf16>, vector<36x128xbf16>, vector<128x128xf32> -> vector<128x128xf32>
    %c0_32 = arith.constant 0 : index
    %c0_33 = arith.constant 0 : index
    %42 = vector.load %arg4[%c0_32, %c0_33] : memref<1x128xf32, #tpu.memory_space<vmem>>, vector<1x128xf32>
    %43 = vector.broadcast %42 : vector<1x128xf32> to vector<128x128xf32>
    %44 = arith.addf %41, %43 : vector<128x128xf32>
    %cst_34 = arith.constant 0.000000e+00 : f32
    %45 = vector.broadcast %cst_34 : f32 to vector<128x128xf32>
    %46 = arith.maximumf %44, %45 : vector<128x128xf32>
    %c0_35 = arith.constant 0 : index
    %c0_36 = arith.constant 0 : index
    %c0_37 = arith.constant 0 : index
    %47 = vector.load %arg5[%c0_35, %c0_36, %c0_37] : memref<1x128x128xf32, #tpu.memory_space<vmem>>, vector<1x128x128xf32>
    %48 = vector.shape_cast %47 : vector<1x128x128xf32> to vector<128x128xf32>
    %49 = vector.shape_cast %46 : vector<128x128xf32> to vector<1x128x128xf32>
    tpu.vector_store %arg5[%c0_35, %c0_36, %c0_37], %49 {strides = array<i32>} : memref<1x128x128xf32, #tpu.memory_space<vmem>>, vector<1x128x128xf32>,
    return
  }
  func.func @transform_0(%arg0: i32, %arg1: i32) -> (i32, i32, i32, i32) {
    %c0_i32 = arith.constant 0 : i32
    %c0_i32_0 = arith.constant 0 : i32
    %c0_i32_1 = arith.constant 0 : i32
    %c0_i32_2 = arith.constant 0 : i32
    return %arg0, %c0_i32, %c0_i32_0, %c0_i32_1 : i32, i32, i32, i32
  }
  func.func @transform_1(%arg0: i32, %arg1: i32) -> (i32, i32) {
    %c0_i32 = arith.constant 0 : i32
    %c0_i32_0 = arith.constant 0 : i32
    %c0_i32_1 = arith.constant 0 : i32
    return %c0_i32, %c0_i32_0 : i32, i32
  }
  func.func @transform_2(%arg0: i32, %arg1: i32) -> (i32, i32) {
    %c0_i32 = arith.constant 0 : i32
    %c0_i32_0 = arith.constant 0 : i32
    %c0_i32_1 = arith.constant 0 : i32
    return %c0_i32, %c0_i32_0 : i32, i32
  }
  func.func @transform_3(%arg0: i32, %arg1: i32) -> (i32, i32, i32) {
    %c0_i32 = arith.constant 0 : i32
    %c0_i32_0 = arith.constant 0 : i32
    return %arg0, %arg1, %c0_i32 : i32, i32, i32
  }
}

</mosaic_0001>

<bundles_post_ra>
// kernel: conv_block_forward.1
= control target key start
LH: loop header
LB: loop body
LE: loop exit
PB: predicated region body
PF: predicated region fallthrough
CT: control target
= control target key end

     0   :  { %s1864_s12 = smov 0   ;;  %s1866_s13 = smov 0   ;;  %s2440_s0 = inlined_call_operand.vmem [shape: bf16[2,18,18,4], index: 0, kind: input, shape index: {}]   ;;  %s2441_s1 = inlined_call_operand.vmem [shape: bf16[36,128], index: 1, kind: input, shape index: {}]   ;;  %s2442_s2 = inlined_call_operand.vmem [shape: f32[1,128], index: 2, kind: input, shape index: {}]   ;;  %s2443_s3 = inlined_call_operand.vmem [shape: f32[2,256,128], index: 3, kind: output, shape index: {}]  }
   0x1   :  { %s1868_s14 = smov 0   ;;  %s1870_s15 = smov 0  }
   0x2   :  { %s1872_s16 = smov 0  }
   0x3 LB: > { %s22_s17 = sadd.s32 1, %s1826_s14  ;;  %s25_s18 = sadd.s32 1, %s1830_s15  ;;  %s1834_s16 = sphi %s1872_s16, %s13_s16   ;;  %s1830_s15 = sphi %s1870_s15, %s2447_s15   ;;  %s1826_s14 = sphi %s1868_s14, %s2446_s14   ;;  %s1822_s13 = sphi %s1866_s13, %s2445_s13   ;;  %s1818_s12 = sphi %s1864_s12, %s2444_s12  }
   0x4   : > { %p23_p0 = scmp.ge.s32.totalorder %s22_s17, 2  ;;  %p1468_p1 = scmp.ge.s32.totalorder %s1834_s16, 1 }
   0x5   : > { %p151_p2 = scmp.lt.s32.totalorder %s1834_s16, 5 }
   0x6   : > { %s2449_s17 = smov (%p23_p0, %s22_s17), 0  ;;  %s2451_s18 = smov (!%p23_p0, %s25_s18), %s1830_s15 }
   0x7   : > { %p152_p3 = pnand %p1468_p1, %p151_p2  ;;  %p27_p4 = scmp.ge.s32.totalorder %s2451_s18, 2 }
   0x8   : > { %p179_p5 = scmp.lt.s32.totalorder (!%p152_p3), %s1822_s13, 1  ;;  %s1630_s19 = smul.u32 (!%p152_p3), 96, %s1818_s12  ;;  %vm504_vm0 = vcmask (!%p152_p3), 1046528   ;;  %vm367_vm1 = vsmask.f32 (!%p152_p3), 7424  ;;  %vm1237_vm2 = vcmask (!%p152_p3), 1041408  }
   0x9   : > { %s2453_s18 = smov (%p27_p4, %s2451_s18), 0  ;;  %155 = sbr.rel (%p152_p3) target bundleno = 487 (0x1e7), region = 32 }
   0xa   : > { %s1836_s25 = smov (!%p152_p3), 12   ;;  %s1837_s26 = smov (!%p152_p3), 8   ;;  %vm1057_vm3 = vcmask (!%p152_p3), 31744   ;;  %vm1074_vm4 = vcmask (!%p152_p3), 64512   ;;  %vm1091_vm5 = vcmask (!%p152_p3), 97280   ;;  %vm1108_vm6 = vcmask (!%p152_p3), 130048  }
   0xb   : > { %s1838_s27 = smov (!%p152_p3), 4   ;;  %s1839_s28 = smov (!%p152_p3), 16   ;;  %vm1125_vm7 = vcmask (!%p152_p3), 162816   ;;  %vm1142_vm8 = vcmask (!%p152_p3), 195584   ;;  %vm1159_vm9 = vcmask (!%p152_p3), 228352   ;;  %vm1176_vm10 = vcmask (!%p152_p3), 261120  }
   0xc   : > { %s1840_s29 = smov (!%p152_p3), 20   ;;  %s1841_s5 = smov (!%p152_p3), 24   ;;  %vm1220_vm11 = vcmask (!%p152_p3), 293888  }
   0xd   : > { %s1842_s8 = smov (!%p152_p3), 28   ;;  %s1843_s9 = smov (!%p152_p3), 32  }
  0x10   : > { %s2455_s13 = smov (!%p179_p5, %s1822_s13), 1 }
  0x11   : > { %s1672_s20 = smul.u32 216, %s2455_s13 }
  0x13   : > { %s183_s23 = scalar_lea.vmem %s2440_s0, %s1672_s20  ;;  %s1471_s20 = sshll.u32 %s2455_s13, 5 }
  0x14   : > { %s1903_s24 = scalar_lea.vmem %s183_s23, %s1630_s19  ;;  %s1470_s19 = sshll.u32 %s1818_s12, 4 }
  0x15   : > { %v1486_v0 = vld [vmem:[%s1903_s24 + $0x3c] sm:$0xf]  ;;  %v1907_v1 = vld [vmem:[%s1903_s24 + $0x40] sm:$0xf]  ;;  %v1478_v3 = vld [vmem:[%s1903_s24 + $0xc] sm:$0xf] }
  0x16   : > { %v1910_v2 = vcombine.low %v1486_v0, %v1907_v1  ;;  %v1914_v4 = vld [vmem:[%s1903_s24 + $0x10] sm:$0xf]  ;;  %v208_v6 = vld [vmem:[%s1903_s24 + $0x34] sm:$0xf]  ;;  %v200_v12 = vld [vmem:[%s1903_s24 + $0x4] sm:$0xf] }
  0x17   : > { %v1917_v5 = vcombine.low %v1478_v3, %v1914_v4  ;;  %v227_v7 = vld [vmem:[%s1903_s24 + $0x30] sm:$0xe]  ;;  %v1924_v8 = vld [vmem:[%s1903_s24 + $0x38] ss:$0 sps:$4 sm:$0x11]   ;;  %p187_p6 = scmp.lt.s32.totalorder %s1470_s19, 31 }
  0x18   : > { %593 = vrot.lane.b32.xlu1 %v1910_v2, %s1836_s25  ;;  %v1564_v9 = vcombine.low %v227_v7, %v208_v6  ;;  %v207_v10 = vld [vmem:[%s1903_s24 + $0x30] sm:$0xf]  ;;  %v676_v11 = vshll.u32 %v1910_v2, 16  ;;  %v518_v14 = vrot.slane %v1924_v8, 1  ;;  %v223_v15 = vld [vmem:[%s1903_s24] sm:$0xe] }
  0x19   : > { %585 = vrot.lane.b32.xlu0 %v1917_v5, %s1836_s25  ;;  %v199_v16 = vld [vmem:[%s1903_s24] sm:$0xf]  ;;  %v628_v17 = vshll.u32 %v1917_v5, 16  ;;  %v1935_v18 = vcombine.low %v207_v10, %v208_v6  ;;  %v1728_v19 = vld [vmem:[%s1903_s24 + $0x8] ss:$0 sps:$4 sm:$0x11]   ;;  %v1560_v20 = vcombine.low %v223_v15, %v200_v12 }
  0x1a   : > { %v517_v13 = vrot.slane %v1564_v9, 1  ;;  %v209_v21 = vld [vmem:[%s1903_s24 + $0x3c] sm:$0xf]  ;;  %v1940_v23 = vcombine.low %v199_v16, %v200_v12  ;;  %v210_v24 = vld [vmem:[%s1903_s24 + $0x40] sm:$0xf]  ;;  %v506_v27 = vrot.slane %v1728_v19, 1 }
  0x1b   : > { %v228_v25 = vld [vmem:[%s1903_s24 + $0x3c] sm:$0xe]  ;;  %v505_v26 = vrot.slane %v1560_v20, 1  ;;  %v1732_v28 = vld [vmem:[%s1903_s24 + $0x44] ss:$0 sps:$4 sm:$0x11]   ;;  %v1947_v31 = vcombine.low %v209_v21, %v210_v24 }
  0x1c   : > { %v519_v22 = vsel %vm504_vm0, %v517_v13, %v518_v14  ;;  %v1565_v29 = vcombine.low %v228_v25, %v210_v24  ;;  %v417_v30 = vshrl.u32 %v1935_v18, 16  ;;  %v201_v32 = vld [vmem:[%s1903_s24 + $0xc] sm:$0xf]  ;;  %v202_v33 = vld [vmem:[%s1903_s24 + $0x10] sm:$0xf]  ;;  %v521_v36 = vrot.slane %v1732_v28, 1 }
  0x1d   : > { %537 = vrot.lane.b32.xlu1 %v519_v22, %s1837_s26  ;;  %v507_v34 = vsel %vm504_vm0, %v505_v26, %v506_v27  ;;  %v224_v37 = vld [vmem:[%s1903_s24 + $0xc] sm:$0xe]  ;;  %v1953_v38 = vcombine.low %v201_v32, %v202_v33  ;;  %v1735_v39 = vld [vmem:[%s1903_s24 + $0x14] ss:$0 sps:$4 sm:$0x11]   ;;  %v369_v41 = vshrl.u32 %v1940_v23, 16 }
  0x1e   : > { %v520_v35 = vrot.slane %v1565_v29, 1  ;;  %529 = vrot.lane.b32.xlu0 %v507_v34, %s1837_s26  ;;  %v1561_v40 = vcombine.low %v224_v37, %v202_v33  ;;  %v371_v42 = vshll.u32 %v1940_v23, 16  ;;  %v376_v43 = vshll.u32 %v1728_v19, 16  ;;  %v1488_v52 = vld [vmem:[%s1903_s24 + $0x48] sm:$0xf]  ;;  %s2457_s19 = smov (!%p187_p6, %s1470_s19), 31 }
  0x1f   : > { %v381_v45 = vshrl.u32 %v1953_v38, 16  ;;  %v383_v46 = vshll.u32 %v1953_v38, 16  ;;  %v429_v47 = vshrl.u32 %v1947_v31, 16  ;;  %v509_v49 = vrot.slane %v1735_v39, 1  ;;  %v1967_v57 = vld [vmem:[%s1903_s24 + $0x4c] sm:$0xf]  ;;  %s190_s21 = sadd.s32 %s1471_s20, %s2457_s19 }
  0x20   : > { %v522_v44 = vsel %vm504_vm0, %v520_v35, %v521_v36  ;;  %v508_v48 = vrot.slane %v1561_v40, 1  ;;  %v388_v50 = vshll.u32 %v1735_v39, 16  ;;  %v373_v51 = vrot.slane %v371_v42, 1  ;;  %v1480_v62 = vld [vmem:[%s1903_s24 + $0x18] sm:$0xf] }
  0x21   : > { %539 = vrot.lane.b32.xlu1 %v522_v44, %s1837_s26  ;;  %v385_v53 = vrot.slane %v383_v46, 1  ;;  %v378_v54 = vrot.slane %v376_v43, 1  ;;  %v431_v55 = vshll.u32 %v1947_v31, 16  ;;  %v436_v56 = vshll.u32 %v1732_v28, 16  ;;  %v1973_v63 = vld [vmem:[%s1903_s24 + $0x1c] sm:$0xf] }
  0x22   : > { %v510_v58 = vsel %vm504_vm0, %v508_v48, %v509_v49  ;;  %v390_v59 = vrot.slane %v388_v50, 1  ;;  %v374_v60 = vor.u32 %v373_v51, %v369_v41  ;;  %v419_v61 = vshll.u32 %v1935_v18, 16  ;;  %v1980_v13 = vld [vmem:[%s1903_s24 + $0x44] ss:$0 sps:$4 sm:$0x11]  }
  0x23   : > { %531 = vrot.lane.b32.xlu0 %v510_v58, %s1837_s26  ;;  %v386_v0 = vor.u32 %v385_v53, %v381_v45  ;;  %v433_v3 = vrot.slane %v431_v55, 1  ;;  %v438_v6 = vrot.slane %v436_v56, 1  ;;  %v424_v7 = vshll.u32 %v1924_v8, 16  ;;  %v1985_v20 = vld [vmem:[%s1903_s24 + $0x14] ss:$0 sps:$4 sm:$0x11]  }
  0x24   : > { %v379_v9 = vsel %vm367_vm1, %v374_v60, %v378_v54  ;;  %v421_v10 = vrot.slane %v419_v61, 1  ;;  %v1573_v12 = vcombine.low %v1488_v52, %v1967_v57  ;;  %v1569_v19 = vcombine.low %v1480_v62, %v1973_v63  ;;  %v1992_v24 = vld [vmem:[%s1903_s24 + $0x50] ss:$0 sps:$4 sm:$0x11]   ;;  %v1506_v40 = vld [vmem:[%s1903_s24 + $0x3c] sm:$0xe] }
  0x25   : > { %v391_v14 = vsel %vm367_vm1, %v386_v0, %v390_v59  ;;  %v434_v15 = vor.u32 %v433_v3, %v429_v47  ;;  %v426_v16 = vrot.slane %v424_v7, 1  ;;  %v674_v21 = vshrl.u32 %v1910_v2, 16  ;;  %v1502_v43 = vld [vmem:[%s1903_s24 + $0xc] sm:$0xe]  ;;  %v1507_v49 = vld [vmem:[%s1903_s24 + $0x48] sm:$0xe] }
  0x26   : > { %466 = vrot.lane.b32.xlu1 %v391_v14, %s1838_s27  ;;  %v422_v8 = vor.u32 %v421_v10, %v417_v30  ;;  %v678_v22 = vrot.slane %v676_v11, 1  ;;  %v688_v26 = vshll.u32 %v1573_v12, 16  ;;  %v681_v27 = vshll.u32 %v1980_v13, 16  ;;  %v2003_v11 = vld [vmem:[%s1903_s24 + $0x20] ss:$0 sps:$4 sm:$0x11]  }
  0x27   : > { %464 = vrot.lane.b32.xlu0 %v379_v9, %s1838_s27  ;;  %v439_v25 = vsel %vm367_vm1, %v434_v15, %v438_v6  ;;  %v626_v28 = vshrl.u32 %v1917_v5, 16  ;;  %v640_v30 = vshll.u32 %v1569_v19, 16  ;;  %v630_v32 = vrot.slane %v628_v17, 1  ;;  %v1503_v53 = vld [vmem:[%s1903_s24 + $0x18] sm:$0xe] }
  0x28   : > { %v427_v29 = vsel %vm367_vm1, %v422_v8, %v426_v16  ;;  %v633_v2 = vshll.u32 %v1985_v20, 16  ;;  %v679_v33 = vor.u32 %v678_v22, %v674_v21  ;;  %v683_v34 = vrot.slane %v681_v27, 1  ;;  %v1520_v54 = vld [vmem:[%s1903_s24 + $0x48] sm:$0xf]  ;;  %v1512_v55 = vld [vmem:[%s1903_s24 + $0x18] sm:$0xf] }
  0x29   : > { %v631_v35 = vor.u32 %v630_v32, %v626_v28  ;;  %v686_v36 = vshrl.u32 %v1573_v12, 16  ;;  %v690_v37 = vrot.slane %v688_v26, 1  ;;  %v693_v39 = vshll.u32 %v1992_v24, 16  ;;  %v2030_v60 = vld [vmem:[%s1903_s24 + $0x1c] sm:$0xf] }
  0x2a   : > { %474 = vrot.lane.b32.xlu1 %v439_v25, %s1838_s27  ;;  %v635_v5 = vrot.slane %v633_v2, 1  ;;  %v638_v17 = vshrl.u32 %v1569_v19, 16  ;;  %v642_v41 = vrot.slane %v640_v30, 1  ;;  %v645_v42 = vshll.u32 %v2003_v11, 16  ;;  %v1522_v7 = vld [vmem:[%s1903_s24 + $0x54] sm:$0xf] }
  0x2b   : > { %472 = vrot.lane.b32.xlu0 %v427_v29, %s1838_s27  ;;  %v1588_v44 = vcombine.low %v1506_v40, %v1907_v1  ;;  %v684_v45 = vsel %vm367_vm1, %v679_v33, %v683_v34  ;;  %v691_v46 = vor.u32 %v690_v37, %v686_v36  ;;  %v695_v47 = vrot.slane %v693_v39, 1  ;;  %v2022_v1 = vld [vmem:[%s1903_s24 + $0x4c] sm:$0xf]  ;;  %v2040_v9 = vld [vmem:[%s1903_s24 + $0x58] sm:$0xf] }
  0x2c   : > { %v1584_v48 = vcombine.low %v1502_v43, %v1914_v4  ;;  %v636_v50 = vsel %vm367_vm1, %v631_v35, %v635_v5  ;;  %v643_v51 = vor.u32 %v642_v41, %v638_v17  ;;  %v647_v52 = vrot.slane %v645_v42, 1  ;;  %v2047_v14 = vld [vmem:[%s1903_s24 + $0x28] sm:$0xf]  ;;  %v2053_v21 = vld [vmem:[%s1903_s24 + $0x50] ss:$0 sps:$4 sm:$0x11]  }
  0x2d   : > { %v1589_v56 = vcombine.low %v1507_v49, %v1967_v57  ;;  %v696_v4 = vsel %vm367_vm1, %v691_v46, %v695_v47  ;;  %v773_v58 = vrot.slane %v1588_v44, 1  ;;  %v774_v59 = vrot.slane %v1980_v13, 1  ;;  %v1514_v13 = vld [vmem:[%s1903_s24 + $0x24] sm:$0xf]  ;;  %v211_v37 = vld [vmem:[%s1903_s24 + $0x48] sm:$0xf] }
  0x2e   : > { %595 = vrot.lane.b32.xlu1 %v1573_v12, %s1836_s25  ;;  %v1585_v61 = vcombine.low %v1503_v53, %v1973_v63  ;;  %v648_v62 = vsel %vm367_vm1, %v643_v51, %v647_v52  ;;  %v761_v0 = vrot.slane %v1584_v48, 1  ;;  %v762_v3 = vrot.slane %v1985_v20, 1  ;;  %v2060_v26 = vld [vmem:[%s1903_s24 + $0x20] ss:$0 sps:$4 sm:$0x11]  }
  0x2f   : > { %587 = vrot.lane.b32.xlu0 %v1569_v19, %s1836_s25  ;;  %v1596_v57 = vcombine.low %v1520_v54, %v2022_v1  ;;  %v1592_v6 = vcombine.low %v1512_v55, %v2030_v60  ;;  %v775_v10 = vsel %vm504_vm0, %v773_v58, %v774_v59  ;;  %v776_v63 = vrot.slane %v1589_v56, 1  ;;  %v2066_v34 = vld [vmem:[%s1903_s24 + $0x5c] ss:$0 sps:$4 sm:$0x11]   ;;  %v2075_v39 = vld [vmem:[%s1903_s24 + $0x4c] sm:$0xf] }
  0x30   : > { %v777_v12 = vrot.slane %v1992_v24, 1  ;;  %v763_v15 = vsel %vm504_vm0, %v761_v0, %v762_v3  ;;  %v764_v16 = vrot.slane %v1585_v61, 1  ;;  %v765_v19 = vrot.slane %v2003_v11, 1  ;;  %v2071_v36 = vld [vmem:[%s1903_s24 + $0x2c] ss:$0 sps:$4 sm:$0x11]  }
  0x31   : > { %v932_v20 = vshll.u32 %v1596_v57, 16  ;;  %v1597_v8 = vcombine.low %v1522_v7, %v2040_v9  ;;  %v884_v22 = vshll.u32 %v1592_v6, 16  ;;  %v1593_v24 = vcombine.low %v1514_v13, %v2047_v14  ;;  %v203_v40 = vld [vmem:[%s1903_s24 + $0x18] sm:$0xf]  ;;  %v2079_v17 = vld [vmem:[%s1903_s24 + $0x1c] sm:$0xf] }
  0x32   : > { %729 = vrot.lane.b32.xlu1 %v684_v45, %s1839_s28  ;;  %v778_v25 = vsel %vm504_vm0, %v776_v63, %v777_v12  ;;  %v766_v27 = vsel %vm504_vm0, %v764_v16, %v765_v19  ;;  %v930_v29 = vshrl.u32 %v1596_v57, 16  ;;  %v937_v32 = vshll.u32 %v2053_v21, 16  ;;  %v1793_v41 = vld [vmem:[%s2441_s1] sm:$0xff]   ;;  %v1540_v42 = vld [vmem:[%s1903_s24 + $0x48] sm:$0xe] }
  0x33   : > { %721 = vrot.lane.b32.xlu0 %v636_v50, %s1839_s28  ;;  %v944_v28 = vshll.u32 %v1597_v8, 16  ;;  %v934_v30 = vrot.slane %v932_v20, 1  ;;  %v896_v2 = vshll.u32 %v1593_v24, 16  ;;  %v882_v11 = vshrl.u32 %v1592_v6, 16  ;;  %v1536_v47 = vld [vmem:[%s1903_s24 + $0x18] sm:$0xe]  ;;  %1642 = vmatprep.subr.bf16.mxu0 %v1793_v41 }
  0x34   : > { %v886_v33 = vrot.slane %v884_v22, 1  ;;  %v889_v35 = vshll.u32 %v2060_v26, 16  ;;  %v939_v43 = vrot.slane %v937_v32, 1  ;;  %v942_v44 = vshrl.u32 %v1597_v8, 16  ;;  %1664 = vmatprep.subr.bf16.mxu1 %v1793_v41  ;;  %1643 = vmatpush3.bf16.msra.mxu0 %v1793_v41  ;;  %v1794_v56 = vld [vmem:[%s2441_s1 + $0x8] sm:$0xff]  }
  0x35   : > { %v935_v5 = vor.u32 %v934_v30, %v930_v29  ;;  %v946_v45 = vrot.slane %v944_v28, 1  ;;  %v949_v46 = vshll.u32 %v2066_v34, 16  ;;  %v894_v48 = vshrl.u32 %v1593_v24, 16  ;;  %1667 = vmatpush3.bf16.msra.mxu1 %v1793_v41  ;;  %v2103_v61 = vld [vmem:[%s1903_s24 + $0x50] ss:$0 sps:$4 sm:$0x11]   ;;  %1644 = vmatprep.subr.bf16.mxu0 %v1794_v56 }
  0x36   : > { %731 = vrot.lane.b32.xlu1 %v696_v4, %s1839_s28  ;;  %v898_v49 = vrot.slane %v896_v2, 1  ;;  %v901_v50 = vshll.u32 %v2071_v36, 16  ;;  %v2091_v51 = vcombine.low %v211_v37, %v2075_v39  ;;  %v887_v52 = vor.u32 %v886_v33, %v882_v11  ;;  %v213_v7 = vld [vmem:[%s1903_s24 + $0x54] sm:$0xf]  ;;  %1665 = vmatprep.subr.bf16.mxu1 %v1794_v56  ;;  %v205_v13 = vld [vmem:[%s1903_s24 + $0x24] sm:$0xf] }
  0x37   : > { %723 = vrot.lane.b32.xlu0 %v648_v62, %s1839_s28  ;;  %v891_v53 = vrot.slane %v889_v35, 1  ;;  %v2094_v54 = vcombine.low %v203_v40, %v2079_v17  ;;  %v1612_v55 = vcombine.low %v1540_v42, %v2022_v1  ;;  %v1608_v4 = vcombine.low %v1536_v47, %v2030_v60  ;;  %v1541_v16 = vld [vmem:[%s1903_s24 + $0x54] sm:$0xe]  ;;  %v2145_v40 = vld [vmem:[%s1903_s24 + $0x5c] ss:$0 sps:$4 sm:$0x11]  }
  0x38   : > { %v947_v58 = vor.u32 %v946_v45, %v942_v44  ;;  %v951_v59 = vrot.slane %v949_v46, 1  ;;  %v940_v1 = vsel %vm367_vm1, %v935_v5, %v939_v43  ;;  %v899_v62 = vor.u32 %v898_v49, %v894_v48  ;;  %1645 = vmatpush3.bf16.msra.mxu0 %v1794_v56 }
  0x39   : > { %v903_v0 = vrot.slane %v901_v50, 1  ;;  %v443_v3 = vshll.u32 %v2091_v51, 16  ;;  %v892_v60 = vsel %vm367_vm1, %v887_v52, %v891_v53  ;;  %v1029_v63 = vrot.slane %v1612_v55, 1  ;;  %1668 = vmatpush3.bf16.msra.mxu1 %v1794_v56  ;;  %v229_v53 = vld [vmem:[%s1903_s24 + $0x48] sm:$0xe] }
  0x3a   : > { %793 = vrot.lane.b32.xlu1 %v775_v10, %s1840_s29  ;;  %v2115_v10 = vld [vmem:[%s1903_s24 + $0x58] sm:$0xf]  ;;  %v1030_v12 = vrot.slane %v2053_v21, 1  ;;  %v952_v19 = vsel %vm367_vm1, %v947_v58, %v951_v59  ;;  %v1017_v20 = vrot.slane %v1608_v4, 1  ;;  %v448_v22 = vshll.u32 %v2103_v61, 16 }
  0x3b   : > { %785 = vrot.lane.b32.xlu0 %v763_v15, %s1840_s29  ;;  %v2120_v15 = vld [vmem:[%s1903_s24 + $0x28] sm:$0xf]  ;;  %v904_v21 = vsel %vm367_vm1, %v899_v62, %v903_v0  ;;  %v2132_v28 = vcombine.low %v213_v7, %v2115_v10  ;;  %v393_v29 = vshrl.u32 %v2094_v54, 16  ;;  %v1613_v2 = vcombine.low %v1541_v16, %v2040_v9  ;;  %v2150_v9 = vld [vmem:[%s1903_s24 + $0x2c] ss:$0 sps:$4 sm:$0x11]  }
  0x3c   : > { %v2137_v32 = vcombine.low %v205_v13, %v2120_v15  ;;  %v450_v33 = vrot.slane %v448_v22, 1  ;;  %v1031_v35 = vsel %vm504_vm0, %v1029_v63, %v1030_v12  ;;  %v1033_v45 = vrot.slane %v2066_v34, 1  ;;  %v230_v7 = vld [vmem:[%s1903_s24 + $0x54] sm:$0xe]  ;;  %v226_v63 = vld [vmem:[%s1903_s24 + $0x24] sm:$0xe] }
  0x3d   : > { %v455_v5 = vshll.u32 %v2132_v28, 16  ;;  %v1032_v44 = vrot.slane %v1613_v2, 1  ;;  %v1021_v47 = vrot.slane %v2071_v36, 1  ;;  %v453_v49 = vshrl.u32 %v2132_v28, 16  ;;  %v225_v36 = vld [vmem:[%s1903_s24 + $0x18] sm:$0xe] }
  0x3e   : > { %795 = vrot.lane.b32.xlu1 %v778_v25, %s1840_s29  ;;  %v441_v25 = vshrl.u32 %v2091_v51, 16  ;;  %v460_v52 = vshll.u32 %v2145_v40, 16  ;;  %v405_v56 = vshrl.u32 %v2137_v32, 16  ;;  %v412_v4 = vshll.u32 %v2150_v9, 16 }
  0x3f   : > { %787 = vrot.lane.b32.xlu0 %v766_v27, %s1840_s29  ;;  %v445_v27 = vrot.slane %v443_v3, 1  ;;  %v457_v50 = vrot.slane %v455_v5, 1  ;;  %v1034_v58 = vsel %vm504_vm0, %v1032_v44, %v1033_v45  ;;  %v1566_v62 = vcombine.low %v229_v53, %v2075_v39  ;;  %v1795_v5 = vld [vmem:[%s2441_s1 + $0x10] ss:$0 sps:$4 sm:$0x33]  }
  0x40   : > { %v1562_v0 = vcombine.low %v225_v36, %v2079_v17  ;;  %v524_v12 = vrot.slane %v2103_v61, 1  ;;  %v1563_v61 = vcombine.low %v226_v63, %v2120_v15  ;;  %v2197_v15 = vld [vmem:[%s1903_s24 + $0x64] sm:$0xf]  ;;  %v2218_v44 = vld [vmem:[%s1903_s24 + $0x2c] ss:$0 sps:$4 sm:$0x11]   ;;  %1670 = vmatprep.subr.msk.bf16.mxu0 %vm1237_vm2, %v1795_v5  ;;  %1671 = vmatprep.subr.msk.bf16.mxu1 %vm1237_vm2, %v1795_v5 }
  0x41   : > { %v446_v37 = vor.u32 %v445_v27, %v441_v25  ;;  %v458_v59 = vor.u32 %v457_v50, %v453_v49  ;;  %v523_v16 = vrot.slane %v1566_v62, 1  ;;  %v527_v27 = vrot.slane %v2145_v40, 1  ;;  %v2224_v53 = vld [vmem:[%s1903_s24 + $0x68] ss:$0 sps:$4 sm:$0x11]  }
  0x42   : > { %849 = vrot.lane.b32.xlu1 %v1596_v57, %s1841_s5  ;;  %v2109_v57 = vld [vmem:[%s1903_s24 + $0x20] ss:$0 sps:$4 sm:$0x11]   ;;  %v511_v17 = vrot.slane %v1562_v0, 1  ;;  %v514_v2 = vrot.slane %v1563_v61, 1  ;;  %v717_v62 = vshll.u32 %v2224_v53, 16 }
  0x43   : > { %841 = vrot.lane.b32.xlu0 %v1592_v6, %s1841_s5  ;;  %v395_v6 = vshll.u32 %v2094_v54, 16  ;;  %v451_v48 = vsel %vm367_vm1, %v446_v37, %v450_v33  ;;  %v512_v13 = vrot.slane %v2109_v57, 1  ;;  %v1484_v33 = vld [vmem:[%s1903_s24 + $0x30] sm:$0xf]  ;;  %v1508_v0 = vld [vmem:[%s1903_s24 + $0x54] sm:$0xe] }
  0x44   : > { %v1504_v63 = vld [vmem:[%s1903_s24 + $0x24] sm:$0xe] }
  0x45   : > { %v397_v30 = vrot.slane %v395_v6, 1  ;;  %v414_v6 = vrot.slane %v412_v4, 1 }
  0x46   : > { %851 = vrot.lane.b32.xlu1 %v1597_v8, %s1841_s5  ;;  %v1018_v8 = vrot.slane %v2060_v26, 1  ;;  %v400_v26 = vshll.u32 %v2109_v57, 16  ;;  %v1482_v57 = vld [vmem:[%s1903_s24 + $0x24] sm:$0xf] }
  0x47   : > { %843 = vrot.lane.b32.xlu0 %v1593_v24, %s1841_s5  ;;  %v1537_v24 = vld [vmem:[%s1903_s24 + $0x24] sm:$0xe]  ;;  %v398_v42 = vor.u32 %v397_v30, %v393_v29  ;;  %v1492_v30 = vld [vmem:[%s1903_s24 + $0x60] sm:$0xf] }
  0x48   : > { %v1609_v11 = vcombine.low %v1537_v24, %v2047_v14  ;;  %v1019_v41 = vsel %vm504_vm0, %v1017_v20, %v1018_v8  ;;  %v402_v43 = vrot.slane %v400_v26, 1  ;;  %v407_v14 = vshll.u32 %v2137_v32, 16  ;;  %v1490_v20 = vld [vmem:[%s1903_s24 + $0x54] sm:$0xf]  ;;  %v2181_v8 = vld [vmem:[%s1903_s24 + $0x58] sm:$0xf] }
  0x49   : > { %v2187_v24 = vld [vmem:[%s1903_s24 + $0x28] sm:$0xf]  ;;  %v513_v26 = vsel %vm504_vm0, %v511_v17, %v512_v13  ;;  %v1575_v40 = vcombine.low %v1492_v30, %v2197_v15 }
  0x4a   : > { %985 = vrot.lane.b32.xlu1 %v940_v1, %s1842_s8  ;;  %v1020_v46 = vrot.slane %v1609_v11, 1  ;;  %v403_v55 = vsel %vm367_vm1, %v398_v42, %v402_v43  ;;  %v409_v34 = vrot.slane %v407_v14, 1  ;;  %v462_v1 = vrot.slane %v460_v52, 1  ;;  %v2213_v43 = vld [vmem:[%s1903_s24 + $0x5c] ss:$0 sps:$4 sm:$0x11]  }
  0x4b   : > { %977 = vrot.lane.b32.xlu0 %v892_v60, %s1842_s8  ;;  %v1570_v29 = vcombine.low %v1482_v57, %v2187_v24  ;;  %v515_v11 = vrot.slane %v2150_v9, 1  ;;  %v712_v45 = vshll.u32 %v1575_v40, 16  ;;  %v705_v49 = vshll.u32 %v2213_v43, 16  ;;  %v1505_v57 = vld [vmem:[%s1903_s24 + $0x30] sm:$0xe] }
  0x4c   : > { %v1022_v3 = vsel %vm504_vm0, %v1020_v46, %v1021_v47  ;;  %v410_v60 = vor.u32 %v409_v34, %v405_v56  ;;  %v463_v39 = vsel %vm367_vm1, %v458_v59, %v462_v1  ;;  %v657_v56 = vshll.u32 %v2218_v44, 16  ;;  %v2228_v34 = vld [vmem:[%s1903_s24 + $0x38] ss:$0 sps:$4 sm:$0x11]  }
  0x4d   : > { %v652_v42 = vshll.u32 %v1570_v29, 16  ;;  %v516_v9 = vsel %vm504_vm0, %v514_v2, %v515_v11  ;;  %v650_v50 = vshrl.u32 %v1570_v29, 16  ;;  %v710_v36 = vshrl.u32 %v1575_v40, 16  ;;  %v1516_v2 = vld [vmem:[%s1903_s24 + $0x30] sm:$0xf] }
  0x4e   : > { %987 = vrot.lane.b32.xlu1 %v952_v19, %s1842_s8  ;;  %v1567_v19 = vcombine.low %v230_v7, %v2115_v10  ;;  %v415_v22 = vsel %vm367_vm1, %v410_v60, %v414_v6  ;;  %v525_v10 = vsel %vm504_vm0, %v523_v16, %v524_v12  ;;  %v714_v1 = vrot.slane %v712_v45, 1  ;;  %v2258_v11 = vld [vmem:[%s1903_s24 + $0x34] sm:$0xf]  ;;  %v2274_v45 = vld [vmem:[%s1903_s24 + $0x40] sm:$0xf] }
  0x4f   : > { %979 = vrot.lane.b32.xlu0 %v904_v21, %s1842_s8  ;;  %v1574_v21 = vcombine.low %v1490_v20, %v2181_v8  ;;  %v654_v52 = vrot.slane %v652_v42, 1  ;;  %v669_v7 = vshll.u32 %v2228_v34, 16  ;;  %v1590_v12 = vcombine.low %v1508_v0, %v2181_v8  ;;  %v2268_v42 = vld [vmem:[%s1903_s24 + $0x70] sm:$0xf] }
  0x50   : > { %v526_v25 = vrot.slane %v1567_v19, 1  ;;  %v719_v16 = vrot.slane %v717_v62, 1  ;;  %v1586_v17 = vcombine.low %v1504_v63, %v2187_v24  ;;  %v1509_v19 = vld [vmem:[%s1903_s24 + $0x60] sm:$0xe] }
  0x51   : > { %v700_v37 = vshll.u32 %v1574_v21, 16  ;;  %v698_v46 = vshrl.u32 %v1574_v21, 16  ;;  %v655_v59 = vor.u32 %v654_v52, %v650_v50  ;;  %v671_v61 = vrot.slane %v669_v7, 1  ;;  %v1524_v24 = vld [vmem:[%s1903_s24 + $0x60] sm:$0xf] }
  0x52   : > { %1049 = vrot.lane.b32.xlu1 %v1031_v35, %s1843_s9  ;;  %v2203_v35 = vld [vmem:[%s1903_s24 + $0x34] sm:$0xf]  ;;  %v1591_v8 = vcombine.low %v1509_v19, %v2197_v15  ;;  %v768_v15 = vrot.slane %v2218_v44, 1  ;;  %v1518_v44 = vld [vmem:[%s1903_s24 + $0x3c] sm:$0xf] }
  0x53   : > { %1041 = vrot.lane.b32.xlu0 %v1019_v41, %s1843_s9  ;;  %v528_v41 = vsel %vm504_vm0, %v526_v25, %v527_v27  ;;  %v1571_v14 = vcombine.low %v1484_v33, %v2203_v35  ;;  %v702_v47 = vrot.slane %v700_v37, 1  ;;  %v780_v25 = vrot.slane %v2213_v43, 1  ;;  %v2251_v27 = vld [vmem:[%s1903_s24 + $0x64] sm:$0xf] }
  0x54   : > { %v1598_v33 = vcombine.low %v1524_v24, %v2251_v27  ;;  %v1789_v50 = vld [vmem:[%s1903_s24 + $0x68] ss:$0 sps:$4 sm:$0x11]  }
  0x55   : > { %v703_v4 = vor.u32 %v702_v47, %v698_v46  ;;  %v662_v60 = vshrl.u32 %v1571_v14, 16 }
  0x56   : > { %476 = vrot.lane.b32.xlu1 %v451_v48, %s1838_s27  ;;  %v1239_v48 = vsel %vm1237_vm2, %v1795_v5, 0  ;;  %v1594_v5 = vcombine.low %v1516_v2, %v2258_v11  ;;  %v956_v46 = vshll.u32 %v1598_v33, 16 }
  0x57   : > { %468 = vrot.lane.b32.xlu0 %v403_v55, %s1838_s27  ;;  %v664_v55 = vshll.u32 %v1571_v14, 16  ;;  %1647 = vmatpush3.bf16.msra.mxu0 %v1239_v48 }
  0x58   : > { %1669 = vmatpush3.bf16.msra.mxu1 %v1239_v48 }
  0x59   : > { %v666_v6 = vrot.slane %v664_v55, 1  ;;  %v1790_v55 = vld [vmem:[%s1903_s24 + $0x38] ss:$0 sps:$4 sm:$0x11]  }
  0x5a   : > { %1051 = vrot.lane.b32.xlu1 %v1034_v58, %s1843_s9  ;;  %v707_v58 = vrot.slane %v705_v49, 1  ;;  %v908_v49 = vshll.u32 %v1594_v5, 16  ;;  %v913_v0 = vshll.u32 %v1790_v55, 16 }
  0x5b   : > { %1043 = vrot.lane.b32.xlu0 %v1022_v3, %s1843_s9  ;;  %v659_v3 = vrot.slane %v657_v56, 1 }
  0x5c   : > { %v708_v13 = vsel %vm367_vm1, %v703_v4, %v707_v58  ;;  %v958_v4 = vrot.slane %v956_v46, 1  ;;  %v906_v58 = vshrl.u32 %v1594_v5, 16 }
  0x5d   : > { %v660_v20 = vsel %vm367_vm1, %v655_v59, %v659_v3  ;;  %v910_v59 = vrot.slane %v908_v49, 1  ;;  %v1792_v3 = vld [vmem:[%s1903_s24 + $0x44] ss:$0 sps:$4 sm:$0x11]  }
  0x5e   : > { %478 = vrot.lane.b32.xlu1 %v463_v39, %s1838_s27  ;;  %v715_v39 = vor.u32 %v714_v1, %v710_v36  ;;  %v961_v36 = vshll.u32 %v1789_v50, 16  ;;  %v1791_v1 = vld [vmem:[%s1903_s24 + $0x74] ss:$0 sps:$4 sm:$0x11]  }
  0x5f   : > { %470 = vrot.lane.b32.xlu0 %v415_v22, %s1838_s27  ;;  %v667_v22 = vor.u32 %v666_v6, %v662_v60  ;;  %v911_v63 = vor.u32 %v910_v59, %v906_v58 }
  0x60   : > { %v963_v7 = vrot.slane %v961_v36, 1 }
  0x61   : > { %v672_v30 = vsel %vm367_vm1, %v667_v22, %v671_v61  ;;  %v1538_v22 = vld [vmem:[%s1903_s24 + $0x30] sm:$0xe] }
  0x62   : > { %541 = vrot.lane.b32.xlu1 %v525_v10, %s1837_s26  ;;  %v779_v10 = vrot.slane %v1590_v12, 1 }
  0x63   : > { %533 = vrot.lane.b32.xlu0 %v513_v26, %s1837_s26  ;;  %v767_v26 = vrot.slane %v1586_v17, 1 }
  0x64   : > { %v781_v37 = vsel %vm504_vm0, %v779_v10, %v780_v25  ;;  %v1610_v10 = vcombine.low %v1538_v22, %v2258_v11  ;;  %v1543_v25 = vld [vmem:[%s1903_s24 + $0x6c] sm:$0xe] }
  0x65   : > { %v769_v43 = vsel %vm504_vm0, %v767_v26, %v768_v15  ;;  %v1539_v15 = vld [vmem:[%s1903_s24 + $0x3c] sm:$0xe] }
  0x66   : > { %543 = vrot.lane.b32.xlu1 %v528_v41, %s1837_s26  ;;  %v1526_v41 = vld [vmem:[%s1903_s24 + $0x6c] sm:$0xf]  ;;  %v1611_v11 = vcombine.low %v1539_v15, %v2274_v45 }
  0x67   : > { %535 = vrot.lane.b32.xlu0 %v516_v9, %s1837_s26  ;;  %v1599_v47 = vcombine.low %v1526_v41, %v2268_v42  ;;  %v1024_v41 = vrot.slane %v1790_v55, 1 }
  0x69   : > { %v968_v56 = vshll.u32 %v1599_v47, 16  ;;  %v966_v6 = vshrl.u32 %v1599_v47, 16 }
  0x6a   : > { %597 = vrot.lane.b32.xlu1 %v1574_v21, %s1836_s25  ;;  %v720_v21 = vsel %vm367_vm1, %v715_v39, %v719_v16  ;;  %v1542_v39 = vld [vmem:[%s1903_s24 + $0x60] sm:$0xe]  ;;  %v915_v16 = vrot.slane %v913_v0, 1  ;;  %s1472_s24 = sshll.u32 %s190_s21, 3 }
  0x6b   : > { %589 = vrot.lane.b32.xlu0 %v1570_v29, %s1836_s25  ;;  %v1587_v29 = vcombine.low %v1505_v57, %v2203_v35  ;;  %v783_v35 = vrot.slane %v2224_v53, 1  ;;  %v1595_v53 = vcombine.low %v1518_v44, %v2274_v45  ;;  %v970_v12 = vrot.slane %v968_v56, 1  ;;  %s2407_s27 = scalar_lea.vmem %s2443_s3, %s1472_s24 }
  0x6c   : > { %v1614_v61 = vcombine.low %v1542_v39, %v2251_v27  ;;  %v916_v24 = vsel %vm367_vm1, %v911_v63, %v915_v16  ;;  %v1615_v27 = vcombine.low %v1543_v25, %v2268_v42 }
  0x6d   : > { %v770_v9 = vrot.slane %v1587_v29, 1  ;;  %v920_v62 = vshll.u32 %v1595_v53, 16  ;;  %v918_v17 = vshrl.u32 %v1595_v53, 16 }
  0x6e   : > { %599 = vrot.lane.b32.xlu1 %v1575_v40, %s1836_s25  ;;  %v782_v40 = vrot.slane %v1591_v8, 1  ;;  %v971_v8 = vor.u32 %v970_v12, %v966_v6  ;;  %v1038_v42 = vrot.slane %v1615_v27, 1 }
  0x6f   : > { %591 = vrot.lane.b32.xlu0 %v1571_v14, %s1836_s25  ;;  %v771_v14 = vrot.slane %v2228_v34, 1  ;;  %v954_v34 = vshrl.u32 %v1598_v33, 16  ;;  %v922_v19 = vrot.slane %v920_v62, 1 }
  0x70   : > { %v784_v48 = vsel %vm504_vm0, %v782_v40, %v783_v35  ;;  %v1036_v40 = vrot.slane %v1789_v50, 1 }
  0x71   : > { %v772_v52 = vsel %vm504_vm0, %v770_v9, %v771_v14  ;;  %v959_v60 = vor.u32 %v958_v4, %v954_v34  ;;  %v1039_v14 = vrot.slane %v1791_v1, 1 }
  0x72   : > { %733 = vrot.lane.b32.xlu1 %v708_v13, %s1839_s28  ;;  %v973_v13 = vshll.u32 %v1791_v1, 16 }
  0x73   : > { %725 = vrot.lane.b32.xlu0 %v660_v20, %s1839_s28  ;;  %v925_v20 = vshll.u32 %v1792_v3, 16  ;;  %v964_v57 = vsel %vm367_vm1, %v959_v60, %v963_v7  ;;  %v1040_v49 = vsel %vm504_vm0, %v1038_v42, %v1039_v14 }
  0x75   : > { %v927_v26 = vrot.slane %v925_v20, 1 }
  0x76   : > { %735 = vrot.lane.b32.xlu1 %v720_v21, %s1839_s28  ;;  %v975_v21 = vrot.slane %v973_v13, 1 }
  0x77   : > { %727 = vrot.lane.b32.xlu0 %v672_v30, %s1839_s28  ;;  %v923_v30 = vor.u32 %v922_v19, %v918_v17 }
  0x79   : > { %v928_v35 = vsel %vm367_vm1, %v923_v30, %v927_v26 }
  0x7a   : > { %797 = vrot.lane.b32.xlu1 %v781_v37, %s1840_s29  ;;  %v1035_v37 = vrot.slane %v1614_v61, 1 }
  0x7b   : > { %789 = vrot.lane.b32.xlu0 %v769_v43, %s1840_s29 }
  0x7c   : > { %v1037_v9 = vsel %vm504_vm0, %v1035_v37, %v1036_v40 }
  0x7e   : > { %799 = vrot.lane.b32.xlu1 %v784_v48, %s1840_s29  ;;  %v1027_v48 = vrot.slane %v1792_v3, 1 }
  0x7f   : > { %791 = vrot.lane.b32.xlu0 %v772_v52, %s1840_s29 }
  0x82   : > { %853 = vrot.lane.b32.xlu1 %v1598_v33, %s1841_s5  ;;  %v976_v33 = vsel %vm367_vm1, %v971_v8, %v975_v21 }
  0x83   : > { %845 = vrot.lane.b32.xlu0 %v1594_v5, %s1841_s5  ;;  %v1023_v5 = vrot.slane %v1610_v10, 1 }
  0x85   : > { %v1025_v46 = vsel %vm504_vm0, %v1023_v5, %v1024_v41 }
  0x86   : > { %855 = vrot.lane.b32.xlu1 %v1599_v47, %s1841_s5  ;;  %v1026_v47 = vrot.slane %v1611_v11, 1 }
  0x87   : > { %847 = vrot.lane.b32.xlu0 %v1595_v53, %s1841_s5 }
  0x88   : > { %v1028_v50 = vsel %vm504_vm0, %v1026_v47, %v1027_v48 }
  0x8a   : > { %v2299_v29 = vpop.permute.xlu1 %593  ;;  %989 = vrot.lane.b32.xlu1 %v964_v57, %s1842_s8 }
  0x8b   : > { %v586_v2 = vpop.permute.xlu0 %585  ;;  %981 = vrot.lane.b32.xlu0 %v916_v24, %s1842_s8 }
  0x8e   : > { %991 = vrot.lane.b32.xlu1 %v976_v33, %s1842_s8 }
  0x8f   : > { %v538_v43 = vpop.permute.xlu1 %537  ;;  %983 = vrot.lane.b32.xlu0 %v928_v35, %s1842_s8 }
  0x90   : > { %v530_v44 = vpop.permute.xlu0 %529 }
  0x92   : > { %1053 = vrot.lane.b32.xlu1 %v1037_v9, %s1843_s9 }
  0x93   : > { %v540_v45 = vpop.permute.xlu1 %539  ;;  %1045 = vrot.lane.b32.xlu0 %v1025_v46, %s1843_s9 }
  0x95   : > { %v532_v52 = vpop.permute.xlu0 %531 }
  0x96   : > { %1055 = vrot.lane.b32.xlu1 %v1040_v49, %s1843_s9 }
  0x97   : > { %1047 = vrot.lane.b32.xlu0 %v1028_v50, %s1843_s9 }
  0x98   : > { %v467_v53 = vpop.permute.xlu1 %466 }
  0x99   : > { %v465_v55 = vpop.permute.xlu0 %464 }
  0x9a   : > { %v1059_v16 = vsel %vm1057_vm3, %v1940_v23, %v465_v55 }
  0x9b   : > { %v1076_v22 = vsel %vm1074_vm4, %v1059_v16, %v530_v44 }
  0x9c   : > { %v475_v56 = vpop.permute.xlu1 %474  ;;  %v1093_v8 = vsel %vm1091_vm5, %v1076_v22, %v586_v2  ;;  %v1061_v2 = vsel %vm1057_vm3, %v1953_v38, %v467_v53 }
  0x9d   : > { %v473_v34 = vpop.permute.xlu0 %472  ;;  %v1078_v35 = vsel %vm1074_vm4, %v1061_v2, %v532_v52 }
  0x9e   : > { %v1067_v39 = vsel %vm1057_vm3, %v1935_v18, %v473_v34 }
  0x9f   : > { %v1084_v19 = vsel %vm1074_vm4, %v1067_v39, %v538_v43 }
  0xa0   : > { %v596_v4 = vpop.permute.xlu1 %595  ;;  %v1101_v61 = vsel %vm1091_vm5, %v1084_v19, %v2299_v29  ;;  %v1069_v29 = vsel %vm1057_vm3, %v1947_v31, %v475_v56 }
  0xa1   : > { %v588_v36 = vpop.permute.xlu0 %587  ;;  %v1086_v11 = vsel %vm1074_vm4, %v1069_v29, %v540_v45 }
  0xa2   : > { %v1103_v31 = vsel %vm1091_vm5, %v1086_v11, %v596_v4  ;;  %v1095_v38 = vsel %vm1091_vm5, %v1078_v35, %v588_v36 }
  0xa4   : > { %v730_v58 = vpop.permute.xlu1 %729 }
  0xa5   : > { %v722_v59 = vpop.permute.xlu0 %721  ;;  %v1118_v18 = vsel %vm1108_vm6, %v1101_v61, %v730_v58 }
  0xa6   : > { %v1110_v21 = vsel %vm1108_vm6, %v1093_v8, %v722_v59 }
  0xa8   : > { %v732_v1 = vpop.permute.xlu1 %731 }
  0xa9   : > { %v724_v62 = vpop.permute.xlu0 %723  ;;  %v1120_v41 = vsel %vm1108_vm6, %v1103_v31, %v732_v1 }
  0xaa   : > { %v1112_v9 = vsel %vm1108_vm6, %v1095_v38, %v724_v62 }
  0xac   : > { %v794_v0 = vpop.permute.xlu1 %793 }
  0xad   : > { %v786_v3 = vpop.permute.xlu0 %785  ;;  %v1135_v10 = vsel %vm1125_vm7, %v1118_v18, %v794_v0 }
  0xae   : > { %v1127_v25 = vsel %vm1125_vm7, %v1110_v21, %v786_v3 }
  0xb0   : > { %v796_v60 = vpop.permute.xlu1 %795 }
  0xb1   : > { %v788_v6 = vpop.permute.xlu0 %787  ;;  %v1137_v42 = vsel %vm1125_vm7, %v1120_v41, %v796_v60 }
  0xb2   : > { %v1129_v14 = vsel %vm1125_vm7, %v1112_v9, %v788_v6 }
  0xb4   : > { %v850_v7 = vpop.permute.xlu1 %849 }
  0xb5   : > { %v842_v63 = vpop.permute.xlu0 %841  ;;  %v1152_v24 = vsel %vm1142_vm8, %v1135_v10, %v850_v7 }
  0xb6   : > { %v1144_v30 = vsel %vm1142_vm8, %v1127_v25, %v842_v63 }
  0xb8   : > { %v852_v12 = vpop.permute.xlu1 %851 }
  0xb9   : > { %v844_v13 = vpop.permute.xlu0 %843  ;;  %v1154_v44 = vsel %vm1142_vm8, %v1137_v42, %v852_v12 }
  0xba   : > { %v1146_v46 = vsel %vm1142_vm8, %v1129_v14, %v844_v13 }
  0xbc   : > { %v986_v17 = vpop.permute.xlu1 %985 }
  0xbd   : > { %v978_v20 = vpop.permute.xlu0 %977  ;;  %v1169_v26 = vsel %vm1159_vm9, %v1152_v24, %v986_v17 }
  0xbe   : > { %v1161_v27 = vsel %vm1159_vm9, %v1144_v30, %v978_v20 }
  0xc0   : > { %v988_v57 = vpop.permute.xlu1 %987 }
  0xc1   : > { %v980_v23 = vpop.permute.xlu0 %979  ;;  %v1171_v47 = vsel %vm1159_vm9, %v1154_v44, %v988_v57 }
  0xc2   : > { %v1163_v45 = vsel %vm1159_vm9, %v1146_v46, %v980_v23 }
  0xc4   : > { %v1050_v15 = vpop.permute.xlu1 %1049 }
  0xc5   : > { %v1042_v33 = vpop.permute.xlu0 %1041  ;;  %v1186_v37 = vsel %vm1176_vm10, %v1169_v26, %v1050_v15 }
  0xc6   : > { %v1178_v40 = vsel %vm1176_vm10, %v1161_v27, %v1042_v33  ;;  %1656 = vmatprep.mubr.msk.bf16.mxu1 %vm1220_vm11, %v1186_v37 }
  0xc7   : > { %1648 = vmatprep.mubr.msk.bf16.mxu0 %vm1220_vm11, %v1178_v40 }
  0xc8   : > { %v477_v5 = vpop.permute.xlu1 %476 }
  0xc9   : > { %v469_v43 = vpop.permute.xlu0 %468  ;;  %v1071_v56 = vsel %vm1057_vm3, %v2091_v51, %v477_v5 }
  0xca   : > { %v1063_v4 = vsel %vm1057_vm3, %v2094_v54, %v469_v43 }
  0xcc   : > { %v1052_v48 = vpop.permute.xlu1 %1051 }
  0xcd   : > { %v1188_v49 = vsel %vm1176_vm10, %v1171_v47, %v1052_v48  ;;  %v1044_v50 = vpop.permute.xlu0 %1043 }
  0xce   : > { %v1180_v52 = vsel %vm1176_vm10, %v1163_v45, %v1044_v50  ;;  %1657 = vmatmul.mubr.msk.bf16.vlgmr.msra.gmra.mrb[0].mxu1 %vm1220_vm11, %v1188_v49  ;;  %v1616_v50 = vld [vmem:[%s2442_s2] ss:$0 sm:$0xff] }
  0xcf   : > { %1649 = vmatmul.mubr.msk.bf16.vlgmr.msra.gmra.mrb[0].mxu0 %vm1220_vm11, %v1180_v52 }
  0xd0   : > { %v479_v53 = vpop.permute.xlu1 %478 }
  0xd1   : > { %v471_v55 = vpop.permute.xlu0 %470  ;;  %v1073_v1 = vsel %vm1057_vm3, %v2132_v28, %v479_v53 }
  0xd2   : > { %v1065_v0 = vsel %vm1057_vm3, %v2137_v32, %v471_v55 }
  0xd4   : > { %v542_v34 = vpop.permute.xlu1 %541 }
  0xd5   : > { %v1088_v36 = vsel %vm1074_vm4, %v1071_v56, %v542_v34  ;;  %v534_v58 = vpop.permute.xlu0 %533 }
  0xd6   : > { %v1080_v59 = vsel %vm1074_vm4, %v1063_v4, %v534_v58 }
  0xd8   : > { %v544_v62 = vpop.permute.xlu1 %543 }
  0xd9   : > { %v1090_v3 = vsel %vm1074_vm4, %v1073_v1, %v544_v62  ;;  %v536_v60 = vpop.permute.xlu0 %535 }
  0xda   : > { %v1082_v51 = vsel %vm1074_vm4, %v1065_v0, %v536_v60 }
  0xdc   : > { %v598_v6 = vpop.permute.xlu1 %597 }
  0xdd   : > { %v590_v7 = vpop.permute.xlu0 %589  ;;  %v1105_v23 = vsel %vm1091_vm5, %v1088_v36, %v598_v6 }
  0xde   : > { %v1097_v10 = vsel %vm1091_vm5, %v1080_v59, %v590_v7 }
  0xe0   : > { %v600_v54 = vpop.permute.xlu1 %599 }
  0xe1   : > { %v592_v63 = vpop.permute.xlu0 %591  ;;  %v1107_v2 = vsel %vm1091_vm5, %v1090_v3, %v600_v54 }
  0xe2   : > { %v1099_v40 = vsel %vm1091_vm5, %v1082_v51, %v592_v63 }
  0xe4   : > { %v734_v12 = vpop.permute.xlu1 %733 }
  0xe5   : > { %v726_v13 = vpop.permute.xlu0 %725  ;;  %v1122_v25 = vsel %vm1108_vm6, %v1105_v23, %v734_v12 }
  0xe6   : > { %v1114_v29 = vsel %vm1108_vm6, %v1097_v10, %v726_v13 }
  0xe8   : > { %v736_v39 = vpop.permute.xlu1 %735 }
  0xe9   : > { %v728_v16 = vpop.permute.xlu0 %727  ;;  %v1124_v11 = vsel %vm1108_vm6, %v1107_v2, %v736_v39 }
  0xea   : > { %v1116_v38 = vsel %vm1108_vm6, %v1099_v40, %v728_v16 }
  0xec   : > { %v798_v17 = vpop.permute.xlu1 %797 }
  0xed   : > { %v790_v19 = vpop.permute.xlu0 %789  ;;  %v1139_v30 = vsel %vm1125_vm7, %v1122_v25, %v798_v17 }
  0xee   : > { %v1131_v26 = vsel %vm1125_vm7, %v1114_v29, %v790_v19 }
  0xf0   : > { %v800_v28 = vpop.permute.xlu1 %799 }
  0xf1   : > { %v792_v20 = vpop.permute.xlu0 %791  ;;  %v1141_v41 = vsel %vm1125_vm7, %v1124_v11, %v800_v28 }
  0xf2   : > { %v1133_v9 = vsel %vm1125_vm7, %v1116_v38, %v792_v20 }
  0xf4   : > { %v854_v22 = vpop.permute.xlu1 %853 }
  0xf5   : > { %v846_v61 = vpop.permute.xlu0 %845  ;;  %v1156_v15 = vsel %vm1142_vm8, %v1139_v30, %v854_v22 }
  0xf6   : > { %v1148_v27 = vsel %vm1142_vm8, %v1131_v26, %v846_v61 }
  0xf8   : > { %v856_v32 = vpop.permute.xlu1 %855 }
  0xf9   : > { %v848_v57 = vpop.permute.xlu0 %847  ;;  %v1158_v42 = vsel %vm1142_vm8, %v1141_v41, %v856_v32 }
  0xfa   : > { %v1150_v14 = vsel %vm1142_vm8, %v1133_v9, %v848_v57 }
  0xfc   : > { %v990_v18 = vpop.permute.xlu1 %989 }
  0xfd   : > { %v982_v8 = vpop.permute.xlu0 %981  ;;  %v1173_v33 = vsel %vm1159_vm9, %v1156_v15, %v990_v18 }
  0xfe   : > { %v1165_v31 = vsel %vm1159_vm9, %v1148_v27, %v982_v8 }
 0x100   : > { %v992_v21 = vpop.permute.xlu1 %991 }
 0x101   : > { %v984_v24 = vpop.permute.xlu0 %983  ;;  %v1175_v44 = vsel %vm1159_vm9, %v1158_v42, %v992_v21 }
 0x102   : > { %v1167_v47 = vsel %vm1159_vm9, %v1150_v14, %v984_v24 }
 0x104   : > { %v1054_v37 = vpop.permute.xlu1 %1053 }
 0x105   : > { %v1190_v35 = vsel %vm1176_vm10, %v1173_v33, %v1054_v37  ;;  %v1046_v5 = vpop.permute.xlu0 %1045 }
 0x106   : > { %v1182_v43 = vsel %vm1176_vm10, %v1165_v31, %v1046_v5  ;;  %1660 = vmatprep.mubr.msk.bf16.mxu1 %vm1220_vm11, %v1190_v35 }
 0x107   : > { %1652 = vmatprep.mubr.msk.bf16.mxu0 %vm1220_vm11, %v1182_v43 }
 0x108   : > { %v1056_v46 = vpop.permute.xlu1 %1055 }
 0x109   : > { %v1192_v48 = vsel %vm1176_vm10, %v1175_v44, %v1056_v46  ;;  %v1048_v45 = vpop.permute.xlu0 %1047 }
 0x10a   : > { %v1184_v49 = vsel %vm1176_vm10, %v1167_v47, %v1048_v45  ;;  %1661 = vmatmul.mubr.msk.bf16.gmra.mrb[4].mxu1 %vm1220_vm11, %v1192_v48 }
 0x10b   : > { %1653 = vmatmul.mubr.msk.bf16.gmra.mrb[4].mxu0 %vm1220_vm11, %v1184_v49 }
 0x1a1   : > { %v1658_v52 = vpop.f32.mrb[0].mxu1 }
 0x1a2   : > { %v1650_v53 = vpop.f32.mrb[0].mxu0  ;;  %v1316_v55 = vadd.f32 %v1658_v52, %v1616_v50  ;;  %v1307_v56 = vpop.f32.mrb[1].mxu1 }
 0x1a3   : > { %v1284_v34 = vadd.f32 %v1650_v53, %v1616_v50  ;;  %v1275_v4 = vpop.f32.mrb[1].mxu0  ;;  %v1308_v36 = vadd.f32 %v1616_v50, %v1307_v56  ;;  %v1659_v58 = vpop.f32.mrb[2].mxu1 }
 0x1a4   : > { %v1348_v59 = vmax.f32 %v1316_v55, 0.0  ;;  %v1276_v1 = vadd.f32 %v1616_v50, %v1275_v4  ;;  %v1651_v62 = vpop.f32.mrb[2].mxu0  ;;  %v1319_v0 = vadd.f32 %v1659_v58, %v1616_v50  ;;  %v1310_v3 = vpop.f32.mrb[3].mxu1 }
 0x1a5   : > { %v1340_v60 = vmax.f32 %v1284_v34, 0.0  ;;  %v1346_v51 = vmax.f32 %v1308_v36, 0.0  ;;  %v1287_v6 = vadd.f32 %v1651_v62, %v1616_v50  ;;  %v1278_v7 = vpop.f32.mrb[3].mxu0  ;;  %v1311_v54 = vadd.f32 %v1616_v50, %v1310_v3 }
 0x1a6   : > { %1364 = vst [vmem:[%s2407_s27 + $0x50] sm:$0xff] %v1348_v59  ;;  %v1338_v63 = vmax.f32 %v1276_v1, 0.0  ;;  %v1349_v12 = vmax.f32 %v1319_v0, 0.0  ;;  %v1279_v13 = vadd.f32 %v1616_v50, %v1278_v7 }
 0x1a7   : > { %1356 = vst [vmem:[%s2407_s27 + $0x10] sm:$0xff] %v1340_v60  ;;  %1362 = vst [vmem:[%s2407_s27 + $0x40] sm:$0xff] %v1346_v51  ;;  %v1341_v39 = vmax.f32 %v1287_v6, 0.0  ;;  %v1347_v16 = vmax.f32 %v1311_v54, 0.0 }
 0x1a8   : > { %1354 = vst [vmem:[%s2407_s27] sm:$0xff] %v1338_v63  ;;  %1365 = vst [vmem:[%s2407_s27 + $0x58] sm:$0xff] %v1349_v12  ;;  %v1339_v17 = vmax.f32 %v1279_v13, 0.0 }
 0x1a9   : > { %1357 = vst [vmem:[%s2407_s27 + $0x18] sm:$0xff] %v1341_v39  ;;  %1363 = vst [vmem:[%s2407_s27 + $0x48] sm:$0xff] %v1347_v16 }
 0x1aa   : > { %1355 = vst [vmem:[%s2407_s27 + $0x8] sm:$0xff] %v1339_v17 }
 0x1dd   : > { %v1662_v19 = vpop.f32.mrb[4].mxu1 }
 0x1de   : > { %v1654_v28 = vpop.f32.mrb[4].mxu0  ;;  %v1332_v20 = vadd.f32 %v1662_v19, %v1616_v50  ;;  %v1323_v22 = vpop.f32.mrb[5].mxu1 }
 0x1df   : > { %v1300_v61 = vadd.f32 %v1654_v28, %v1616_v50  ;;  %v1291_v32 = vpop.f32.mrb[5].mxu0  ;;  %v1324_v57 = vadd.f32 %v1616_v50, %v1323_v22  ;;  %v1663_v18 = vpop.f32.mrb[6].mxu1 }
 0x1e0   : > { %v1352_v8 = vmax.f32 %v1332_v20, 0.0  ;;  %v1292_v23 = vadd.f32 %v1616_v50, %v1291_v32  ;;  %v1655_v21 = vpop.f32.mrb[6].mxu0  ;;  %v1335_v10 = vadd.f32 %v1663_v18, %v1616_v50  ;;  %v1326_v25 = vpop.f32.mrb[7].mxu1 }
 0x1e1   : > { %v1344_v24 = vmax.f32 %v1300_v61, 0.0  ;;  %v1350_v29 = vmax.f32 %v1324_v57, 0.0  ;;  %v1303_v30 = vadd.f32 %v1655_v21, %v1616_v50  ;;  %v1294_v26 = vpop.f32.mrb[7].mxu0  ;;  %v1327_v15 = vadd.f32 %v1616_v50, %v1326_v25 }
 0x1e2   : > { %1368 = vst [vmem:[%s2407_s27 + $0x70] sm:$0xff] %v1352_v8  ;;  %v1342_v2 = vmax.f32 %v1292_v23, 0.0  ;;  %v1353_v27 = vmax.f32 %v1335_v10, 0.0  ;;  %v1295_v33 = vadd.f32 %v1616_v50, %v1294_v26 }
 0x1e3   : > { %1360 = vst [vmem:[%s2407_s27 + $0x30] sm:$0xff] %v1344_v24  ;;  %1366 = vst [vmem:[%s2407_s27 + $0x60] sm:$0xff] %v1350_v29  ;;  %v1345_v37 = vmax.f32 %v1303_v30, 0.0  ;;  %v1351_v40 = vmax.f32 %v1327_v15, 0.0 }
 0x1e4   : > { %1358 = vst [vmem:[%s2407_s27 + $0x20] sm:$0xff] %v1342_v2  ;;  %1369 = vst [vmem:[%s2407_s27 + $0x78] sm:$0xff] %v1353_v27  ;;  %v1343_v11 = vmax.f32 %v1295_v33, 0.0 }
 0x1e5   : > { %1361 = vst [vmem:[%s2407_s27 + $0x38] sm:$0xff] %v1345_v37  ;;  %1367 = vst [vmem:[%s2407_s27 + $0x68] sm:$0xff] %v1351_v40 }
 0x1e6   : > { %1359 = vst [vmem:[%s2407_s27 + $0x28] sm:$0xff] %v1343_v11 }
 0x1e7 PF: > { %s13_s16 = sadd.s32 1, %s1834_s16   ;;  %s2444_s12 = smov %s1826_s14 }
 0x1e8   : > { %p10_p7 = scmp.ge.s32.totalorder %s13_s16, 6   ;;  %s2445_s13 = smov %s1830_s15 }
 0x1e9   : > { %s2446_s14 = smov %s2449_s17  ;;  %s2447_s15 = smov %s2453_s18 }
 0x1ea   :  { %12 = sbr.rel (!%p10_p7) target bundleno = 3 (0x3), region = 65 }

</bundles_post_ra>
